<compile_context>
chip_gen: v6e
topology: v6e:2x2x1
jax: 0.10.0
libtpu: 0.0.40
codegen_flags: <defaults>
</compile_context>

<pallas_src>
import functools

import jax
import jax.numpy as jnp
from jax.experimental import pallas as pl
from jax.experimental.pallas import tpu as pltpu

LANE = 128  # lane-padded hidden / head width


def actor_critic_kernel(x_ref, w_ref, b_ref, u_ref, out_ref, *,
                        feature_n, n_actions):
    x = x_ref[...]            # (B, feature_n) f32
    b = b_ref[...]            # (8, LANE) f32; rows 0/1/2 = b1 / b2 / b_heads

    # fc1 + relu  (W1 occupies rows [:feature_n] of the packed (LANE, LANE) tile)
    w1 = w_ref[0][:feature_n, :]
    h1 = jnp.maximum(
        jnp.dot(x, w1, preferred_element_type=jnp.float32) + b[0:1, :], 0.0)

    # fc2 + relu (padded h1 columns are exactly 0, so padded W2 rows contribute 0)
    h2 = jnp.maximum(
        jnp.dot(h1, w_ref[1], preferred_element_type=jnp.float32) + b[1:2, :], 0.0)

    # Fused actor|critic head:
    #   cols [0, n_actions)  -> action_evals
    #   col  n_actions       -> critic value
    #   remaining cols       -> 0 (padding)
    head = jnp.dot(h2, w_ref[2], preferred_element_type=jnp.float32) + b[2:3, :]

    # --- SampleLayer: gumbel-max argmax over the actor columns -----------------
    u = jnp.clip(u_ref[...], 1e-6, 1.0 - 1e-6)   # keep log(-log(u)) finite
    gumbel = -jnp.log(-jnp.log(u))               # evals - log(-log(U)) == evals + gumbel

    col = jax.lax.broadcasted_iota(jnp.int32, head.shape, 1)
    perturbed = jnp.where(col < n_actions, head + gumbel, -jnp.inf)
    mx = jnp.max(perturbed, axis=1, keepdims=True)
    # first-occurrence argmax (torch.argmax semantics)
    action = jnp.min(jnp.where(perturbed == mx, col, jnp.int32(head.shape[1])),
                     axis=1, keepdims=True)
    action_f = action.astype(jnp.float32)        # exact: index < 2**24

    # Pack [evals | value | action] into one lane-dense slab, single full store.
    out_ref[...] = jnp.where(col == n_actions + 1, action_f, head)


def init_params(key, feature_n, output_n, hidden=10):
    """nn.Linear-style init: U(-1/sqrt(fan_in), 1/sqrt(fan_in))."""
    def linear(k, fan_in, fan_out):
        kw, kb = jax.random.split(k)
        bound = 1.0 / jnp.sqrt(jnp.float32(fan_in))
        w = jax.random.uniform(kw, (fan_in, fan_out), jnp.float32, -bound, bound)
        b = jax.random.uniform(kb, (1, fan_out), jnp.float32, -bound, bound)
        return w, b

    k1, k2, k3, k4 = jax.random.split(key, 4)
    w1, b1 = linear(k1, feature_n, hidden)
    w2, b2 = linear(k2, hidden, hidden)
    wa, ba = linear(k3, hidden, output_n)
    wc, bc = linear(k4, hidden, 1)
    return (w1, b1, w2, b2, wa, ba, wc, bc)


def pack_params(params, feature_n, n_actions, hidden=10):
    """One-time host-side packing into lane-aligned, VMEM-friendly buffers."""
    w1, b1, w2, b2, wa, ba, wc, bc = params
    w1p = jnp.zeros((LANE, LANE), jnp.float32).at[:feature_n, :hidden].set(w1)
    w2p = jnp.zeros((LANE, LANE), jnp.float32).at[:hidden, :hidden].set(w2)
    whp = (jnp.zeros((LANE, LANE), jnp.float32)
           .at[:hidden, :n_actions].set(wa)
           .at[:hidden, n_actions].set(wc[:, 0]))
    w_packed = jnp.stack([w1p, w2p, whp])                      # (3, LANE, LANE)
    b_packed = (jnp.zeros((8, LANE), jnp.float32)
                .at[0, :hidden].set(b1[0])
                .at[1, :hidden].set(b2[0])
                .at[2, :n_actions].set(ba[0])
                .at[2, n_actions].set(bc[0, 0]))               # (8, LANE)
    return w_packed, b_packed


@functools.partial(jax.jit, static_argnames=("feature_n", "n_actions"))
def actor_critic_forward(rng_key, x, w_packed, b_packed, *, feature_n, n_actions):
    batch = x.shape[0]
    # torch.rand_like(action_evals): uniform [0,1) noise (lane-padded columns unused).
    u = jax.random.uniform(rng_key, (batch, LANE), jnp.float32)

    kernel = functools.partial(actor_critic_kernel,
                               feature_n=feature_n, n_actions=n_actions)
    out = pl.pallas_call(
        kernel,
        out_shape=jax.ShapeDtypeStruct((batch, LANE), jnp.float32),
        in_specs=[
            pl.BlockSpec(memory_space=pltpu.MemorySpace.VMEM),   # x
            pl.BlockSpec(memory_space=pltpu.MemorySpace.VMEM),   # packed weights
            pl.BlockSpec(memory_space=pltpu.MemorySpace.VMEM),   # packed biases
            pl.BlockSpec(memory_space=pltpu.MemorySpace.VMEM),   # uniform noise
        ],
        out_specs=pl.BlockSpec(memory_space=pltpu.MemorySpace.VMEM),
    )(x, w_packed, b_packed, u)

    action_evals = out[:, :n_actions]
    values = out[:, n_actions:n_actions + 1]
    actions = out[:, n_actions + 1].astype(jnp.int32)   # (batch,), like torch.argmax(dim=1)
    return actions, action_evals, values


def reference_forward(x, params):
    """Pure-JAX reference for the deterministic part (evals, values)."""
    w1, b1, w2, b2, wa, ba, wc, bc = params
    hp = jax.lax.Precision.HIGHEST
    h1 = jnp.maximum(jnp.dot(x, w1, precision=hp) + b1, 0.0)
    h2 = jnp.maximum(jnp.dot(h1, w2, precision=hp) + b2, 0.0)
    evals = jnp.dot(h2, wa, precision=hp) + ba
    values = jnp.dot(h2, wc, precision=hp) + bc
    return evals, values


if __name__ == "__main__":
    feature_n = 16
    output_n = 6
    batch = 8
    hidden = 10

    key = jax.random.PRNGKey(0)
    kx, kp, kn = jax.random.split(key, 3)

    x = jax.random.normal(kx, (batch, feature_n), jnp.float32)
    params = init_params(kp, feature_n, output_n, hidden)
    w_packed, b_packed = pack_params(params, feature_n, output_n, hidden)

    actions, action_evals, values = actor_critic_forward(
        kn, x, w_packed, b_packed, feature_n=feature_n, n_actions=output_n)
    jax.block_until_ready((actions, action_evals, values))

    # shape + correctness checks (evals/values are deterministic; actions are sampled)
    ref_evals, ref_values = reference_forward(x, params)
    assert actions.shape == (batch,)
    assert action_evals.shape == (batch, output_n)
    assert values.shape == (batch, 1)
    assert jnp.allclose(action_evals, ref_evals, atol=1e-4, rtol=1e-4)
    assert jnp.allclose(values, ref_values, atol=1e-4, rtol=1e-4)
    assert bool(jnp.all((actions >= 0) & (actions < output_n)))

    print("KERNEL_OK")
</pallas_src>

<mosaic_0001>
module attributes {stable_mosaic.version = 11 : i64} {
  func.func @actor_critic_kernel(%arg0: memref<8x16xf32, #tpu.memory_space<vmem>>, %arg1: memref<3x128x128xf32, #tpu.memory_space<vmem>>, %arg2: memref<8x128xf32, #tpu.memory_space<vmem>>, %arg3: memref<8x128xf32, #tpu.memory_space<vmem>>, %arg4: memref<8x128xf32, #tpu.memory_space<vmem>>) attributes {dimension_semantics = [], scalar_prefetch = 0 : i64, scratch_operands = 0 : i64, tpu.core_type = #tpu.core_type<tc>} {
    %c0 = arith.constant 0 : index
    %c0_0 = arith.constant 0 : index
    %0 = vector.load %arg0[%c0, %c0_0] : memref<8x16xf32, #tpu.memory_space<vmem>>, vector<8x16xf32>
    %c0_1 = arith.constant 0 : index
    %c0_2 = arith.constant 0 : index
    %1 = vector.load %arg2[%c0_1, %c0_2] : memref<8x128xf32, #tpu.memory_space<vmem>>, vector<8x128xf32>
    %c0_3 = arith.constant 0 : index
    %c0_4 = arith.constant 0 : index
    %c0_5 = arith.constant 0 : index
    %2 = vector.load %arg1[%c0_3, %c0_4, %c0_5] : memref<3x128x128xf32, #tpu.memory_space<vmem>>, vector<1x128x128xf32>
    %3 = vector.shape_cast %2 : vector<1x128x128xf32> to vector<128x128xf32>
    %4 = vector.extract_strided_slice %3 {offsets = [0, 0], sizes = [16, 128], strides = [1, 1]} : vector<128x128xf32> to vector<16x128xf32>
    %cst = arith.constant dense<0.000000e+00> : vector<8x128xf32>
    %5 = tpu.matmul %0, %4, %cst {dimension_numbers = #tpu.dot_dimension_numbers<[1], [0], [0], [1], [0, 0, 1, 1], [], []>} : vector<8x16xf32>, vector<16x128xf32>, vector<8x128xf32> -> vector<8x128xf32>
    %6 = vector.extract_strided_slice %1 {offsets = [0, 0], sizes = [1, 128], strides = [1, 1]} : vector<8x128xf32> to vector<1x128xf32>
    %7 = vector.broadcast %6 : vector<1x128xf32> to vector<8x128xf32>
    %8 = arith.addf %5, %7 : vector<8x128xf32>
    %cst_6 = arith.constant 0.000000e+00 : f32
    %9 = vector.broadcast %cst_6 : f32 to vector<8x128xf32>
    %10 = arith.maximumf %8, %9 : vector<8x128xf32>
    %c1 = arith.constant 1 : index
    %c0_7 = arith.constant 0 : index
    %c0_8 = arith.constant 0 : index
    %11 = vector.load %arg1[%c1, %c0_7, %c0_8] : memref<3x128x128xf32, #tpu.memory_space<vmem>>, vector<1x128x128xf32>
    %12 = vector.shape_cast %11 : vector<1x128x128xf32> to vector<128x128xf32>
    %cst_9 = arith.constant dense<0.000000e+00> : vector<8x128xf32>
    %13 = tpu.matmul %10, %12, %cst_9 {dimension_numbers = #tpu.dot_dimension_numbers<[1], [0], [0], [1], [0, 0, 1, 1], [], []>} : vector<8x128xf32>, vector<128x128xf32>, vector<8x128xf32> -> vector<8x128xf32>
    %14 = vector.extract_strided_slice %1 {offsets = [1, 0], sizes = [1, 128], strides = [1, 1]} : vector<8x128xf32> to vector<1x128xf32>
    %15 = vector.broadcast %14 : vector<1x128xf32> to vector<8x128xf32>
    %16 = arith.addf %13, %15 : vector<8x128xf32>
    %cst_10 = arith.constant 0.000000e+00 : f32
    %17 = vector.broadcast %cst_10 : f32 to vector<8x128xf32>
    %18 = arith.maximumf %16, %17 : vector<8x128xf32>
    %c2 = arith.constant 2 : index
    %c0_11 = arith.constant 0 : index
    %c0_12 = arith.constant 0 : index
    %19 = vector.load %arg1[%c2, %c0_11, %c0_12] : memref<3x128x128xf32, #tpu.memory_space<vmem>>, vector<1x128x128xf32>
    %20 = vector.shape_cast %19 : vector<1x128x128xf32> to vector<128x128xf32>
    %cst_13 = arith.constant dense<0.000000e+00> : vector<8x128xf32>
    %21 = tpu.matmul %18, %20, %cst_13 {dimension_numbers = #tpu.dot_dimension_numbers<[1], [0], [0], [1], [0, 0, 1, 1], [], []>} : vector<8x128xf32>, vector<128x128xf32>, vector<8x128xf32> -> vector<8x128xf32>
    %22 = vector.extract_strided_slice %1 {offsets = [2, 0], sizes = [1, 128], strides = [1, 1]} : vector<8x128xf32> to vector<1x128xf32>
    %23 = vector.broadcast %22 : vector<1x128xf32> to vector<8x128xf32>
    %24 = arith.addf %21, %23 : vector<8x128xf32>
    %c0_14 = arith.constant 0 : index
    %c0_15 = arith.constant 0 : index
    %25 = vector.load %arg3[%c0_14, %c0_15] : memref<8x128xf32, #tpu.memory_space<vmem>>, vector<8x128xf32>
    %cst_16 = arith.constant 9.99999997E-7 : f32
    %cst_17 = arith.constant 0.999998986 : f32
    %26 = vector.broadcast %cst_16 : f32 to vector<8x128xf32>
    %27 = arith.maximumf %26, %25 : vector<8x128xf32>
    %28 = vector.broadcast %cst_17 : f32 to vector<8x128xf32>
    %29 = arith.minimumf %28, %27 : vector<8x128xf32>
    %30 = math.log %29 : vector<8x128xf32>
    %cst_18 = arith.constant 0.000000e+00 : f32
    %31 = vector.broadcast %cst_18 : f32 to vector<8x128xf32>
    %32 = arith.subf %31, %30 : vector<8x128xf32>
    %33 = math.log %32 : vector<8x128xf32>
    %cst_19 = arith.constant 0.000000e+00 : f32
    %34 = vector.broadcast %cst_19 : f32 to vector<8x128xf32>
    %35 = arith.subf %34, %33 : vector<8x128xf32>
    %36 = tpu.iota {dimensions = array<i32: 1>} : vector<8x128xi32>
    %c6_i32 = arith.constant 6 : i32
    %37 = vector.broadcast %c6_i32 : i32 to vector<8x128xi32>
    %38 = arith.cmpi slt, %36, %37 : vector<8x128xi32>
    %39 = arith.addf %24, %35 : vector<8x128xf32>
    %cst_20 = arith.constant 0xFF800000 : f32
    %40 = vector.broadcast %cst_20 : f32 to vector<8x128xf32>
    %41 = arith.select %38, %39, %40 : vector<8x128xi1>, vector<8x128xf32>
    %cst_21 = arith.constant dense<0xFF800000> : vector<8xf32>
    %42 = vector.multi_reduction <maximumf>, %41, %cst_21 [1] : vector<8x128xf32> to vector<8xf32>
    %43 = vector.shape_cast %42 : vector<8xf32> to vector<8x1xf32>
    %44 = vector.broadcast %43 : vector<8x1xf32> to vector<8x128xf32>
    %45 = arith.cmpf oeq, %41, %44 : vector<8x128xf32>
    %c128_i32 = arith.constant 128 : i32
    %46 = vector.broadcast %c128_i32 : i32 to vector<8x128xi32>
    %47 = arith.select %45, %36, %46 : vector<8x128xi1>, vector<8x128xi32>
    %cst_22 = arith.constant dense<2147483647> : vector<8xi32>
    %48 = vector.multi_reduction <minsi>, %47, %cst_22 [1] : vector<8x128xi32> to vector<8xi32>
    %49 = vector.shape_cast %48 : vector<8xi32> to vector<8x1xi32>
    %50 = arith.sitofp %49 : vector<8x1xi32> to vector<8x1xf32>
    %c7_i32 = arith.constant 7 : i32
    %51 = vector.broadcast %c7_i32 : i32 to vector<8x128xi32>
    %52 = arith.cmpi eq, %36, %51 : vector<8x128xi32>
    %53 = vector.shape_cast %50 : vector<8x1xf32> to vector<8x1xf32>
    %54 = vector.broadcast %53 : vector<8x1xf32> to vector<8x128xf32>
    %55 = arith.select %52, %54, %24 : vector<8x128xi1>, vector<8x128xf32>
    %c0_23 = arith.constant 0 : index
    %c0_24 = arith.constant 0 : index
    %56 = vector.load %arg4[%c0_23, %c0_24] : memref<8x128xf32, #tpu.memory_space<vmem>>, vector<8x128xf32>
    tpu.vector_store %arg4[%c0_23, %c0_24], %55 {strides = array<i32>} : memref<8x128xf32, #tpu.memory_space<vmem>>, vector<8x128xf32>,
    return
  }
}

</mosaic_0001>

<bundles_post_ra>
// kernel: actor_critic_forward.1
= control target key start
LH: loop header
LB: loop body
LE: loop exit
PB: predicated region body
PF: predicated region fallthrough
CT: control target
= control target key end

     0   :  { %9 = vsyncpa [#allocation3], 0  ;;  %s484_s15 = smov [#allocation2]   ;;  %s569_s0 = inlined_call_operand.vmem [shape: f32[8,16], index: 0, kind: input, shape index: {}]   ;;  %s570_s1 = inlined_call_operand.hbm [shape: f32[3,128,128], index: 1, kind: input, shape index: {}]   ;;  %s571_s2 = inlined_call_operand.vmem [shape: f32[8,128], index: 2, kind: input, shape index: {}]   ;;  %s572_s3 = inlined_call_operand.vmem [shape: f32[8,128], index: 3, kind: input, shape index: {}]   ;;  %s573_s4 = inlined_call_operand.vmem [shape: f32[8,128], index: 4, kind: output, shape index: {}]  }
   0x1   :  { %s17_s16 = sshll.u32 %s484_s15, 4  ;;  %s18_s16 = int_to_ptr.vmem [resolvable:$true] %s17_s16 }
   0x2   :  { %s470_s17 = scalar_lea.vmem %s18_s16, 6144  ;;  %p475_p1 = scmp.lt.s32.totalorder %s18_s16, %s18_s16 }
   0x3   :  { %p471_p0 = scmp.ne.s32.totalorder %s18_s16, %s470_s17  ;;  %p476_p2 = scmp.lt.s32.totalorder %s470_s17, %s470_s17 }
   0x5   :  { %p477_p3 = por %p476_p2, %p475_p1 }
   0x7   :  { %p478_p4 = pnand %p477_p3, %p471_p0 }
   0x9   :  { %481 = shalt.err (!%p478_p4)
}
   0xa   :  { %s485_s18 = smov 128   ;;  %s486_s19 = smov 8  }
   0xb   :  { %23 = dma.hbm_to_vmem [thread:$0]  %s570_s1, 6144, %s18_s16, [#allocation3], %s485_s18, %s485_s18, %s486_s19  }
   0xc   :  { %482 = dma.done.wait [#allocation3], 6144  }
   0xd   :  { %483 = vsyncadd [#allocation3], 4294961152  ;;  %v487_v0 = vmov 0.0   ;;  %vm488_vm0 = vmmov 0   ;;  %v34_v1 = vld [vmem:[#allocation2 + $0x8] sm:$0xff]  ;;  %v33_v2 = vld [vmem:[#allocation2] sm:$0xff]  ;;  %v35_v33 = vlaneseq }
   0xe   :  { %376 = vmatprep.subr.mxu0 %v487_v0  ;;  %380 = vmatprep.mubr.msk.f32.mxu0 %vm488_vm0, %v487_v0  ;;  %v31_v3 = vld [vmem:[%s569_s0] sm:$0xff]  ;;  %vm39_vm1 = vcmask 130048   ;;  %v130_v4 = vld [vmem:[#allocation2 + $0xf8] sm:$0xff]  ;;  %v129_v5 = vld [vmem:[#allocation2 + $0xf0] sm:$0xff] }
   0xf   :  { %383 = vmatprep.subr.mxu1 %v487_v0  ;;  %415 = vmatprep.mubr.msk.f32.mxu1 %vm488_vm0, %v487_v0  ;;  %v128_v6 = vld [vmem:[#allocation2 + $0xe8] sm:$0xff]  ;;  %v127_v7 = vld [vmem:[#allocation2 + $0xe0] sm:$0xff]  ;;  %v126_v8 = vld [vmem:[#allocation2 + $0xd8] sm:$0xff]  ;;  %v36_v34 = vshrl.u32 %v35_v33, 7  ;;  %v307_v61 = vand.u32 127, %v35_v33 }
  0x10   :  { %377 = vmatpush3.msra.mxu0 %v34_v1  ;;  %384 = vmatpush3.msra.mxu1 %v130_v4  ;;  %v125_v9 = vld [vmem:[#allocation2 + $0xd0] sm:$0xff]  ;;  %v124_v10 = vld [vmem:[#allocation2 + $0xc8] sm:$0xff]  ;;  %v123_v11 = vld [vmem:[#allocation2 + $0xc0] sm:$0xff] }
  0x11   :  { %378 = vmatprep.subr.mxu0 %v487_v0  ;;  %385 = vmatprep.subr.mxu1 %v487_v0  ;;  %v122_v12 = vld [vmem:[#allocation2 + $0xb8] sm:$0xff]  ;;  %v121_v13 = vld [vmem:[#allocation2 + $0xb0] sm:$0xff]  ;;  %v120_v14 = vld [vmem:[#allocation2 + $0xa8] sm:$0xff]  ;;  %v37_v35 = vsub.s32 0, %v36_v34  ;;  %v133_v45 = vsub.s32 1, %v36_v34  ;;  %v225_v58 = vsub.s32 2, %v36_v34 }
  0x12   :  { %379 = vmatpush3.msra.mxu0 %v33_v2  ;;  %386 = vmatpush3.msra.mxu1 %v129_v5  ;;  %v119_v15 = vld [vmem:[#allocation2 + $0xa0] sm:$0xff]  ;;  %v118_v16 = vld [vmem:[#allocation2 + $0x98] sm:$0xff]  ;;  %v117_v17 = vld [vmem:[#allocation2 + $0x90] sm:$0xff]  ;;  %vm308_vm2 = vcmp.lt.s32.totalorder %v307_v61, 6  ;;  %vm330_vm5 = vcmp.eq.s32.totalorder %v307_v61, 7 }
  0x13   :  { %381 = vmatmul.mubr.msk.f32.vlgmr.msra.gmra.mxu0 %vm39_vm1, %v31_v3  ;;  %387 = vmatprep.subr.mxu1 %v487_v0  ;;  %v116_v18 = vld [vmem:[#allocation2 + $0x88] sm:$0xff]  ;;  %v115_v19 = vld [vmem:[#allocation2 + $0x80] sm:$0xff]  ;;  %v222_v20 = vld [vmem:[#allocation2 + $0x178] sm:$0xff] }
  0x14   :  { %418 = vmatprep.subr.mxu0 %v487_v0  ;;  %388 = vmatpush3.msra.mxu1 %v128_v6  ;;  %v221_v21 = vld [vmem:[#allocation2 + $0x170] sm:$0xff]  ;;  %v220_v22 = vld [vmem:[#allocation2 + $0x168] sm:$0xff]  ;;  %v219_v23 = vld [vmem:[#allocation2 + $0x160] sm:$0xff] }
  0x15   :  { %450 = vmatprep.mubr.msk.f32.mxu0 %vm488_vm0, %v487_v0  ;;  %389 = vmatprep.subr.mxu1 %v487_v0  ;;  %v218_v24 = vld [vmem:[#allocation2 + $0x158] sm:$0xff]  ;;  %v217_v25 = vld [vmem:[#allocation2 + $0x150] sm:$0xff]  ;;  %v216_v26 = vld [vmem:[#allocation2 + $0x148] sm:$0xff] }
  0x16   :  { %390 = vmatpush3.msra.mxu1 %v127_v7  ;;  %419 = vmatpush3.msra.mxu0 %v222_v20  ;;  %v215_v27 = vld [vmem:[#allocation2 + $0x140] sm:$0xff]  ;;  %v214_v28 = vld [vmem:[#allocation2 + $0x138] sm:$0xff]  ;;  %v213_v29 = vld [vmem:[#allocation2 + $0x130] sm:$0xff] }
  0x17   :  { %391 = vmatprep.subr.mxu1 %v487_v0  ;;  %420 = vmatprep.subr.mxu0 %v487_v0  ;;  %v212_v30 = vld [vmem:[#allocation2 + $0x128] sm:$0xff]  ;;  %v211_v31 = vld [vmem:[#allocation2 + $0x120] sm:$0xff]  ;;  %v210_v32 = vld [vmem:[#allocation2 + $0x118] sm:$0xff] }
  0x18   :  { %392 = vmatpush3.msra.mxu1 %v126_v8  ;;  %421 = vmatpush3.msra.mxu0 %v221_v21  ;;  %v32_v36 = vld [vmem:[%s571_s2] sm:$0xff]  ;;  %v209_v42 = vld [vmem:[#allocation2 + $0x110] sm:$0xff]  ;;  %v208_v43 = vld [vmem:[#allocation2 + $0x108] sm:$0xff] }
  0x19   :  { %393 = vmatprep.subr.mxu1 %v487_v0  ;;  %422 = vmatprep.subr.mxu0 %v487_v0  ;;  %v38_v37 = vrot.slane %v32_v36, %v37_v35  ;;  %v207_v44 = vld [vmem:[#allocation2 + $0x100] sm:$0xff]  ;;  %v134_v46 = vrot.slane %v32_v36, %v133_v45  ;;  %v226_v60 = vrot.slane %v32_v36, %v225_v58 }
  0x1a   :  { %394 = vmatpush3.msra.mxu1 %v125_v9  ;;  %423 = vmatpush3.msra.mxu0 %v220_v22  ;;  %v297_v51 = vld [vmem:[%s572_s3] sm:$0xff] }
  0x1b   :  { %395 = vmatprep.subr.mxu1 %v487_v0  ;;  %424 = vmatprep.subr.mxu0 %v487_v0  ;;  %v298_v52 = vmax.f32 %v297_v51, 1e-06 }
  0x1c   :  { %396 = vmatpush3.msra.mxu1 %v124_v10  ;;  %425 = vmatpush3.msra.mxu0 %v219_v23 }
  0x1d   :  { %397 = vmatprep.subr.mxu1 %v487_v0  ;;  %426 = vmatprep.subr.mxu0 %v487_v0  ;;  %v299_v53 = vmin.f32 %v298_v52, 0.999999 }
  0x1e   :  { %398 = vmatpush3.msra.mxu1 %v123_v11  ;;  %427 = vmatpush3.msra.mxu0 %v218_v24 }
  0x1f   :  { %399 = vmatprep.subr.mxu1 %v487_v0  ;;  %428 = vmatprep.subr.mxu0 %v487_v0  ;;  %458 = vlog2.f32 %v299_v53 }
  0x20   :  { %400 = vmatpush3.msra.mxu1 %v122_v12  ;;  %429 = vmatpush3.msra.mxu0 %v217_v25 }
  0x21   :  { %401 = vmatprep.subr.mxu1 %v487_v0  ;;  %430 = vmatprep.subr.mxu0 %v487_v0 }
  0x22   :  { %402 = vmatpush3.msra.mxu1 %v121_v13  ;;  %431 = vmatpush3.msra.mxu0 %v216_v26 }
  0x23   :  { %403 = vmatprep.subr.mxu1 %v487_v0  ;;  %432 = vmatprep.subr.mxu0 %v487_v0 }
  0x24   :  { %404 = vmatpush3.msra.mxu1 %v120_v14  ;;  %433 = vmatpush3.msra.mxu0 %v215_v27 }
  0x25   :  { %405 = vmatprep.subr.mxu1 %v487_v0  ;;  %434 = vmatprep.subr.mxu0 %v487_v0 }
  0x26   :  { %406 = vmatpush3.msra.mxu1 %v119_v15  ;;  %435 = vmatpush3.msra.mxu0 %v214_v28 }
  0x27   :  { %407 = vmatprep.subr.mxu1 %v487_v0  ;;  %436 = vmatprep.subr.mxu0 %v487_v0 }
  0x28   :  { %408 = vmatpush3.msra.mxu1 %v118_v16  ;;  %437 = vmatpush3.msra.mxu0 %v213_v29 }
  0x29   :  { %409 = vmatprep.subr.mxu1 %v487_v0  ;;  %438 = vmatprep.subr.mxu0 %v487_v0 }
  0x2a   :  { %410 = vmatpush3.msra.mxu1 %v117_v17  ;;  %439 = vmatpush3.msra.mxu0 %v212_v30 }
  0x2b   :  { %411 = vmatprep.subr.mxu1 %v487_v0  ;;  %440 = vmatprep.subr.mxu0 %v487_v0 }
  0x2c   :  { %412 = vmatpush3.msra.mxu1 %v116_v18  ;;  %441 = vmatpush3.msra.mxu0 %v211_v31  ;;  %v459_v54 = vpop.eup %458 }
  0x2d   :  { %413 = vmatprep.subr.mxu1 %v487_v0  ;;  %442 = vmatprep.subr.mxu0 %v487_v0  ;;  %v301_v55 = vmul.f32 0.6931472, %v459_v54 }
  0x2e   :  { %414 = vmatpush3.msra.mxu1 %v115_v19  ;;  %443 = vmatpush3.msra.mxu0 %v210_v32 }
  0x2f   :  { %444 = vmatprep.subr.mxu0 %v487_v0  ;;  %v302_v56 = vsub.f32 0.0, %v301_v55 }
  0x30   :  { %445 = vmatpush3.msra.mxu0 %v209_v42 }
  0x31   :  { %446 = vmatprep.subr.mxu0 %v487_v0  ;;  %460 = vlog2.f32 %v302_v56 }
  0x32   :  { %447 = vmatpush3.msra.mxu0 %v208_v43 }
  0x33   :  { %448 = vmatprep.subr.mxu0 %v487_v0 }
  0x34   :  { %449 = vmatpush3.msra.mxu0 %v207_v44 }
  0x3e   :  { %v461_v57 = vpop.eup %460 }
  0x3f   :  { %v304_v59 = vmul.f32 0.6931472, %v461_v57 }
  0x41   :  { %v305_v62 = vsub.f32 0.0, %v304_v59 }
  0xd3   :  { %v109_v38 = vpop.f32.mrf.mxu0 }
  0xd4   :  { %v110_v39 = vadd.f32 %v109_v38, %v38_v37 }
  0xd5   :  { %v382_v40 = vpop.f32.mrf.mxu0 }
  0xd6   :  { %v113_v41 = vmax.f32 %v110_v39, 0.0 }
  0xd8   :  { %416 = vmatmul.mubr.f32.vlgmr.msra.gmra.mxu1 %v113_v41 }
 0x198   :  { %v201_v47 = vpop.f32.mrf.mxu1 }
 0x199   :  { %v202_v48 = vadd.f32 %v201_v47, %v134_v46 }
 0x19a   :  { %v417_v49 = vpop.f32.mrf.mxu1 }
 0x19b   :  { %v205_v50 = vmax.f32 %v202_v48, 0.0 }
 0x19d   :  { %451 = vmatmul.mubr.f32.vlgmr.msra.gmra.mxu0 %v205_v50 }
 0x25d   :  { %v293_v63 = vpop.f32.mrf.mxu0 }
 0x25e   :  { %v294_v0 = vadd.f32 %v293_v63, %v226_v60 }
 0x25f   :  { %v452_v1 = vpop.f32.mrf.mxu0 }
 0x260   :  { %v309_v2 = vadd.f32 %v305_v62, %v294_v0 }
 0x262   :  { %v310_v3 = vsel %vm308_vm2, %v309_v2, -inf }
 0x263   :  { %311 = vmax.xlane.f32.xlu0 %v310_v3 }
 0x2ec   :  { %v312_v4 = vpop.xlane.xlu0 %311 }
 0x2ed   :  { %vm313_vm3 = vcmp.eq.f32.partialorder %v310_v3, %v312_v4 }
 0x2ee   :  { %v314_v5 = vsel %vm313_vm3, %v307_v61, 128 }
 0x2ef   :  { %v316_v6 = vshra.s32 %v314_v5, 16  ;;  %v315_v8 = vand.u32 65535, %v314_v5 }
 0x2f1   :  { %v318_v7 = vcvt.s32.f32 %v316_v6  ;;  %v317_v10 = vcvt.s32.f32 %v315_v8 }
 0x2f3   :  { %319 = vmin.xlane.f32.xlu0 %v318_v7 }
 0x37c   :  { %v320_v9 = vpop.xlane.xlu0 %319 }
 0x37d   :  { %vm321_vm4 = vcmp.eq.f32.partialorder %v318_v7, %v320_v9  ;;  %v326_v12 = vcvt.f32.s32 %v320_v9 }
 0x37e   :  { %v322_v11 = vsel %vm321_vm4, %v317_v10, inf }
 0x37f   :  { %323 = vmin.xlane.f32.xlu1 %v322_v11  ;;  %v327_v14 = vshll.u32 %v326_v12, 16 }
 0x408   :  { %v324_v13 = vpop.xlane.xlu1 %323 }
 0x409   :  { %v325_v15 = vcvt.f32.s32 %v324_v13 }
 0x40b   :  { %v328_v16 = vadd.s32 %v327_v14, %v325_v15 }
 0x40d   :  { %v329_v17 = vcvt.s32.f32 %v328_v16 }
 0x40f   :  { %v331_v18 = vsel %vm330_vm5, %v329_v17, %v294_v0 }
 0x410   :  { %332 = vst [vmem:[%s573_s4] sm:$0xff] %v331_v18 }
 0x411   :  { %337 = vsyncpa [#allocation3], 1 }

</bundles_post_ra>
